<compile_context>
chip_gen: v5e
topology: v5e:2x2
jax: 0.10.0
libtpu: 0.0.40
codegen_flags: <defaults>
</compile_context>

<pallas_src>
import math
import jax
import jax.numpy as jnp
from jax.experimental import pallas as pl
from jax.experimental.pallas import tpu as pltpu


# ----------------------------- Pallas kernel --------------------------------
def _fused_embedding_mlp_kernel(steps_ref, table_ref, w1_ref, b1_ref, w2_ref, b2_ref, o_ref):
    # steps_ref: SMEM (B,) int32          table_ref: VMEM (T, E) f32
    # w1_ref: (E, P) bf16/f32  b1_ref: (1, P) f32
    # w2_ref: (P, P) bf16/f32  b2_ref: (1, P) f32
    # o_ref : (B, P) f32
    B = o_ref.shape[0]
    T = table_ref.shape[0]

    # ---- In-kernel gather of the embedding rows via an exact one-hot matmul.
    # (No dynamic addressing needed; B is small and static, scalar reads come from SMEM.)
    col_ids = jax.lax.broadcasted_iota(jnp.int32, (B, T), dimension=1)          # (B, T)
    step_rows = jnp.concatenate(
        [jnp.full((1, T), steps_ref[b], dtype=jnp.int32) for b in range(B)], axis=0)
    onehot = (col_ids == step_rows).astype(jnp.float32)                          # (B, T)
    x = jnp.dot(onehot, table_ref[...], preferred_element_type=jnp.float32)      # (B, E) f32

    # ---- projection1 -> SiLU  (bf16 operands on MXU, f32 accumulate, f32 VPU/EUP math)
    h = jnp.dot(x.astype(w1_ref.dtype), w1_ref[...],
                preferred_element_type=jnp.float32) + b1_ref[...]
    h = h * jax.nn.sigmoid(h)

    # ---- projection2 -> SiLU
    y = jnp.dot(h.astype(w2_ref.dtype), w2_ref[...],
                preferred_element_type=jnp.float32) + b2_ref[...]
    y = y * jax.nn.sigmoid(y)

    o_ref[...] = y.astype(o_ref.dtype)


def diffusion_embedding_forward(diffusion_step, table, w1, b1, w2, b2):
    """Fused forward: table gather + projection1 + SiLU + projection2 + SiLU in ONE pallas_call.

    diffusion_step : (B,) int32 indices into the table.
    table          : (T, E) f32 sin/cos table.
    w1 : (E, P), b1 : (1, P), w2 : (P, P), b2 : (1, P)  (weights may be bf16 or f32).
    """
    B = diffusion_step.shape[0]
    T, E = table.shape
    P = w1.shape[1]

    return pl.pallas_call(
        _fused_embedding_mlp_kernel,
        out_shape=jax.ShapeDtypeStruct((B, P), jnp.float32),
        grid_spec=pltpu.PrefetchScalarGridSpec(
            num_scalar_prefetch=1,                     # diffusion_step -> SMEM
            grid=(1,),
            in_specs=[
                pl.BlockSpec((T, E), lambda i, steps: (0, 0)),   # embedding table (full block)
                pl.BlockSpec((E, P), lambda i, steps: (0, 0)),   # w1
                pl.BlockSpec((1, P), lambda i, steps: (0, 0)),   # b1
                pl.BlockSpec((P, P), lambda i, steps: (0, 0)),   # w2
                pl.BlockSpec((1, P), lambda i, steps: (0, 0)),   # b2
            ],
            out_specs=pl.BlockSpec((B, P), lambda i, steps: (0, 0)),
        ),
        compiler_params=pltpu.CompilerParams(
            dimension_semantics=("arbitrary",),
        ),
    )(diffusion_step.astype(jnp.int32), table, w1, b1, w2, b2)


def precompute_all_embeddings(table, w1, b1, w2, b2):
    """Run the SAME kernel once for every integer step in [0, num_steps).

    Lets the denoising hot loop replace the MLP with a trivial row gather from the cache.
    """
    T = table.shape[0]
    all_steps = jnp.arange(T, dtype=jnp.int32)
    return diffusion_embedding_forward(all_steps, table, w1, b1, w2, b2)   # (T, P)


def diffusion_embedding_forward_cached(diffusion_step, cache):
    # Per-sampling-step hot path: just a gather of precomputed outputs.
    return cache[diffusion_step]


# ----------------------------- Module glue ----------------------------------
def build_embedding_table(num_steps, half_dim):
    """Matches DiffusionEmbedding._build_embedding (half_dim = embedding_dim / 2)."""
    steps = jnp.arange(num_steps, dtype=jnp.float32)[:, None]                 # (T, 1)
    freqs = 10.0 ** (jnp.arange(half_dim, dtype=jnp.float32)
                     / (half_dim - 1) * 4.0)[None, :]                         # (1, half)
    table = steps * freqs                                                     # (T, half)
    return jnp.concatenate([jnp.sin(table), jnp.cos(table)], axis=1)          # (T, 2*half)


def init_params(key, embedding_dim, projection_dim):
    """Deterministic nn.Linear-style init (uniform +/- 1/sqrt(fan_in)), stored (in, out)."""
    k1, k2, k3, k4 = jax.random.split(key, 4)
    lim1 = 1.0 / math.sqrt(embedding_dim)
    lim2 = 1.0 / math.sqrt(projection_dim)
    w1 = jax.random.uniform(k1, (embedding_dim, projection_dim), jnp.float32, -lim1, lim1)
    b1 = jax.random.uniform(k2, (1, projection_dim), jnp.float32, -lim1, lim1)
    w2 = jax.random.uniform(k3, (projection_dim, projection_dim), jnp.float32, -lim2, lim2)
    b2 = jax.random.uniform(k4, (1, projection_dim), jnp.float32, -lim2, lim2)
    return w1, b1, w2, b2


def _reference_forward(diffusion_step, table, w1, b1, w2, b2):
    x = table[diffusion_step]
    h = x @ w1 + b1
    h = h * jax.nn.sigmoid(h)
    y = h @ w2 + b2
    return y * jax.nn.sigmoid(y)


# --------------------------------- Main --------------------------------------
if __name__ == "__main__":
    num_steps = 50
    embedding_dim = 128
    projection_dim = 128
    batch = 8

    key = jax.random.PRNGKey(0)
    k_params, k_steps = jax.random.split(key)

    table = build_embedding_table(num_steps, embedding_dim // 2)               # (50, 128) f32
    w1_f32, b1, w2_f32, b2 = init_params(k_params, embedding_dim, projection_dim)
    # bf16 weight storage for the MXU; accumulation / bias / SiLU stay f32 in-kernel.
    w1 = w1_f32.astype(jnp.bfloat16)
    w2 = w2_f32.astype(jnp.bfloat16)

    diffusion_step = jax.random.randint(k_steps, (batch,), 0, num_steps, dtype=jnp.int32)

    # Path 1: fused gather + MLP in a single Pallas kernel (per-call path).
    out = diffusion_embedding_forward(diffusion_step, table, w1, b1, w2, b2)
    out = jax.block_until_ready(out)

    # Path 2: precompute all num_steps outputs once (same kernel, B = num_steps),
    # then the hot loop is just a gather.
    cache = jax.block_until_ready(precompute_all_embeddings(table, w1, b1, w2, b2))
    out_cached = jax.block_until_ready(diffusion_embedding_forward_cached(diffusion_step, cache))

    # f32 reference (PyTorch-equivalent math); bf16 weights loosen the tolerance.
    ref = _reference_forward(diffusion_step, table, w1_f32, b1, w2_f32, b2)

    assert out.shape == (batch, projection_dim)
    assert jnp.allclose(out, ref, atol=3e-2, rtol=3e-2), float(jnp.max(jnp.abs(out - ref)))
    assert jnp.allclose(out_cached, ref, atol=3e-2, rtol=3e-2)
    assert jnp.allclose(out, out_cached, atol=1e-5, rtol=1e-5)

    # TODO(synk): some repos extend DiffusionEmbedding with _lerp_embedding for non-integer
    # steps; the module given here only indexes with integer steps, which is what we implement.

    print("KERNEL_OK")
</pallas_src>

<mosaic_0001>
module attributes {stable_mosaic.version = 11 : i64} {
  func.func @_fused_embedding_mlp_kernel(%arg0: i32, %arg1: memref<8xi32, #tpu.memory_space<smem>>, %arg2: memref<50x128xf32, #tpu.memory_space<vmem>>, %arg3: memref<128x128xbf16, #tpu.memory_space<vmem>>, %arg4: memref<1x128xf32, #tpu.memory_space<vmem>>, %arg5: memref<128x128xbf16, #tpu.memory_space<vmem>>, %arg6: memref<1x128xf32, #tpu.memory_space<vmem>>, %arg7: memref<8x128xf32, #tpu.memory_space<vmem>>) attributes {dimension_semantics = [#tpu.dimension_semantics<arbitrary>], iteration_bounds = array<i64: 1>, scalar_prefetch = 1 : i64, scratch_operands = 0 : i64, tpu.core_type = #tpu.core_type<tc>, window_params = [{pipeline_mode = #tpu.pipeline_mode<synchronous>, transform_indices = @transform_0, window_bounds = array<i64: 50, 128>}, {pipeline_mode = #tpu.pipeline_mode<synchronous>, transform_indices = @transform_1, window_bounds = array<i64: 128, 128>}, {pipeline_mode = #tpu.pipeline_mode<synchronous>, transform_indices = @transform_2, window_bounds = array<i64: 1, 128>}, {pipeline_mode = #tpu.pipeline_mode<synchronous>, transform_indices = @transform_3, window_bounds = array<i64: 128, 128>}, {pipeline_mode = #tpu.pipeline_mode<synchronous>, transform_indices = @transform_4, window_bounds = array<i64: 1, 128>}, {pipeline_mode = #tpu.pipeline_mode<synchronous>, transform_indices = @transform_5, window_bounds = array<i64: 8, 128>}]} {
    %0 = tpu.iota {dimensions = array<i32: 1>} : vector<8x50xi32>
    %c0 = arith.constant 0 : index
    %1 = memref.load %arg1[%c0] : memref<8xi32, #tpu.memory_space<smem>>
    %2 = vector.broadcast %1 : i32 to vector<1x50xi32>
    %c1 = arith.constant 1 : index
    %3 = memref.load %arg1[%c1] : memref<8xi32, #tpu.memory_space<smem>>
    %4 = vector.broadcast %3 : i32 to vector<1x50xi32>
    %c2 = arith.constant 2 : index
    %5 = memref.load %arg1[%c2] : memref<8xi32, #tpu.memory_space<smem>>
    %6 = vector.broadcast %5 : i32 to vector<1x50xi32>
    %c3 = arith.constant 3 : index
    %7 = memref.load %arg1[%c3] : memref<8xi32, #tpu.memory_space<smem>>
    %8 = vector.broadcast %7 : i32 to vector<1x50xi32>
    %c4 = arith.constant 4 : index
    %9 = memref.load %arg1[%c4] : memref<8xi32, #tpu.memory_space<smem>>
    %10 = vector.broadcast %9 : i32 to vector<1x50xi32>
    %c5 = arith.constant 5 : index
    %11 = memref.load %arg1[%c5] : memref<8xi32, #tpu.memory_space<smem>>
    %12 = vector.broadcast %11 : i32 to vector<1x50xi32>
    %c6 = arith.constant 6 : index
    %13 = memref.load %arg1[%c6] : memref<8xi32, #tpu.memory_space<smem>>
    %14 = vector.broadcast %13 : i32 to vector<1x50xi32>
    %c7 = arith.constant 7 : index
    %15 = memref.load %arg1[%c7] : memref<8xi32, #tpu.memory_space<smem>>
    %16 = vector.broadcast %15 : i32 to vector<1x50xi32>
    %17 = tpu.concatenate %2, %4, %6, %8, %10, %12, %14, %16 in 0 : vector<1x50xi32>, vector<1x50xi32>, vector<1x50xi32>, vector<1x50xi32>, vector<1x50xi32>, vector<1x50xi32>, vector<1x50xi32>, vector<1x50xi32> -> vector<8x50xi32>
    %18 = arith.cmpi eq, %0, %17 : vector<8x50xi32>
    %19 = arith.extui %18 : vector<8x50xi1> to vector<8x50xi32>
    %20 = arith.sitofp %19 : vector<8x50xi32> to vector<8x50xf32>
    %c0_0 = arith.constant 0 : index
    %c0_1 = arith.constant 0 : index
    %21 = vector.load %arg2[%c0_0, %c0_1] : memref<50x128xf32, #tpu.memory_space<vmem>>, vector<50x128xf32>
    %cst = arith.constant dense<0.000000e+00> : vector<8x128xf32>
    %22 = tpu.matmul %20, %21, %cst {dimension_numbers = #tpu.dot_dimension_numbers<[1], [0], [0], [1], [0, 0, 1, 1], [], []>} : vector<8x50xf32>, vector<50x128xf32>, vector<8x128xf32> -> vector<8x128xf32>
    %23 = arith.truncf %22 : vector<8x128xf32> to vector<8x128xbf16>
    %c0_2 = arith.constant 0 : index
    %c0_3 = arith.constant 0 : index
    %24 = vector.load %arg3[%c0_2, %c0_3] : memref<128x128xbf16, #tpu.memory_space<vmem>>, vector<128x128xbf16>
    %cst_4 = arith.constant dense<0.000000e+00> : vector<8x128xf32>
    %25 = tpu.matmul %23, %24, %cst_4 {dimension_numbers = #tpu.dot_dimension_numbers<[1], [0], [0], [1], [0, 0, 1, 1], [], []>} : vector<8x128xbf16>, vector<128x128xbf16>, vector<8x128xf32> -> vector<8x128xf32>
    %c0_5 = arith.constant 0 : index
    %c0_6 = arith.constant 0 : index
    %26 = vector.load %arg4[%c0_5, %c0_6] : memref<1x128xf32, #tpu.memory_space<vmem>>, vector<1x128xf32>
    %27 = vector.broadcast %26 : vector<1x128xf32> to vector<8x128xf32>
    %28 = arith.addf %25, %27 : vector<8x128xf32>
    %29 = arith.negf %28 : vector<8x128xf32>
    %30 = math.exp %29 : vector<8x128xf32>
    %cst_7 = arith.constant 1.000000e+00 : f32
    %31 = vector.broadcast %cst_7 : f32 to vector<8x128xf32>
    %32 = arith.addf %31, %30 : vector<8x128xf32>
    %33 = arith.divf %31, %32 : vector<8x128xf32>
    %34 = arith.mulf %28, %33 : vector<8x128xf32>
    %35 = arith.truncf %34 : vector<8x128xf32> to vector<8x128xbf16>
    %c0_8 = arith.constant 0 : index
    %c0_9 = arith.constant 0 : index
    %36 = vector.load %arg5[%c0_8, %c0_9] : memref<128x128xbf16, #tpu.memory_space<vmem>>, vector<128x128xbf16>
    %cst_10 = arith.constant dense<0.000000e+00> : vector<8x128xf32>
    %37 = tpu.matmul %35, %36, %cst_10 {dimension_numbers = #tpu.dot_dimension_numbers<[1], [0], [0], [1], [0, 0, 1, 1], [], []>} : vector<8x128xbf16>, vector<128x128xbf16>, vector<8x128xf32> -> vector<8x128xf32>
    %c0_11 = arith.constant 0 : index
    %c0_12 = arith.constant 0 : index
    %38 = vector.load %arg6[%c0_11, %c0_12] : memref<1x128xf32, #tpu.memory_space<vmem>>, vector<1x128xf32>
    %39 = vector.broadcast %38 : vector<1x128xf32> to vector<8x128xf32>
    %40 = arith.addf %37, %39 : vector<8x128xf32>
    %41 = arith.negf %40 : vector<8x128xf32>
    %42 = math.exp %41 : vector<8x128xf32>
    %cst_13 = arith.constant 1.000000e+00 : f32
    %43 = vector.broadcast %cst_13 : f32 to vector<8x128xf32>
    %44 = arith.addf %43, %42 : vector<8x128xf32>
    %45 = arith.divf %43, %44 : vector<8x128xf32>
    %46 = arith.mulf %40, %45 : vector<8x128xf32>
    %c0_14 = arith.constant 0 : index
    %c0_15 = arith.constant 0 : index
    %47 = vector.load %arg7[%c0_14, %c0_15] : memref<8x128xf32, #tpu.memory_space<vmem>>, vector<8x128xf32>
    tpu.vector_store %arg7[%c0_14, %c0_15], %46 {strides = array<i32>} : memref<8x128xf32, #tpu.memory_space<vmem>>, vector<8x128xf32>,
    return
  }
  func.func @transform_0(%arg0: i32, %arg1: memref<8xi32, #tpu.memory_space<smem>>) -> (i32, i32) {
    %c0_i32 = arith.constant 0 : i32
    %c0_i32_0 = arith.constant 0 : i32
    %c0_i32_1 = arith.constant 0 : i32
    return %c0_i32, %c0_i32_0 : i32, i32
  }
  func.func @transform_1(%arg0: i32, %arg1: memref<8xi32, #tpu.memory_space<smem>>) -> (i32, i32) {
    %c0_i32 = arith.constant 0 : i32
    %c0_i32_0 = arith.constant 0 : i32
    %c0_i32_1 = arith.constant 0 : i32
    return %c0_i32, %c0_i32_0 : i32, i32
  }
  func.func @transform_2(%arg0: i32, %arg1: memref<8xi32, #tpu.memory_space<smem>>) -> (i32, i32) {
    %c0_i32 = arith.constant 0 : i32
    %c0_i32_0 = arith.constant 0 : i32
    %c0_i32_1 = arith.constant 0 : i32
    return %c0_i32, %c0_i32_0 : i32, i32
  }
  func.func @transform_3(%arg0: i32, %arg1: memref<8xi32, #tpu.memory_space<smem>>) -> (i32, i32) {
    %c0_i32 = arith.constant 0 : i32
    %c0_i32_0 = arith.constant 0 : i32
    %c0_i32_1 = arith.constant 0 : i32
    return %c0_i32, %c0_i32_0 : i32, i32
  }
  func.func @transform_4(%arg0: i32, %arg1: memref<8xi32, #tpu.memory_space<smem>>) -> (i32, i32) {
    %c0_i32 = arith.constant 0 : i32
    %c0_i32_0 = arith.constant 0 : i32
    %c0_i32_1 = arith.constant 0 : i32
    return %c0_i32, %c0_i32_0 : i32, i32
  }
  func.func @transform_5(%arg0: i32, %arg1: memref<8xi32, #tpu.memory_space<smem>>) -> (i32, i32) {
    %c0_i32 = arith.constant 0 : i32
    %c0_i32_0 = arith.constant 0 : i32
    %c0_i32_1 = arith.constant 0 : i32
    return %c0_i32, %c0_i32_0 : i32, i32
  }
}

</mosaic_0001>

<bundles_post_ra>
// kernel: tpu_custom_call.1
= control target key start
LH: loop header
LB: loop body
LE: loop exit
PB: predicated region body
PF: predicated region fallthrough
CT: control target
= control target key end

     0   :  { %s597_s24 = smov [#allocation3]   ;;  %s671_s0 = inlined_call_operand.hbm [shape: s32[8], index: 0, kind: input, shape index: {}]   ;;  %s672_s1 = inlined_call_operand.hbm [shape: f32[50,128], index: 1, kind: input, shape index: {}]   ;;  %s673_s2 = inlined_call_operand.hbm [shape: bf16[128,128], index: 2, kind: input, shape index: {}]   ;;  %s674_s3 = inlined_call_operand.vmem [shape: f32[1,128], index: 3, kind: input, shape index: {}]   ;;  %s675_s4 = inlined_call_operand.hbm [shape: bf16[128,128], index: 4, kind: input, shape index: {}]   ;;  %s676_s5 = inlined_call_operand.vmem [shape: f32[1,128], index: 5, kind: input, shape index: {}]   ;;  %s677_s6 = inlined_call_operand.hbm [shape: f32[8,128], index: 6, kind: output, shape index: {}]  }
   0x1   :  { %s12_s23 = sshll.u32 %s671_s0, 4  ;;  %s13_s23 = int_to_ptr.hbm [resolvable:$true] %s12_s23 }
   0x2   :  { %15 = dma.hbm_to_smem %s13_s23, 16, %s597_s24, [#allocation2] }
   0x3   :  { %589 = dma.done.wait [#allocation2], 16 }
   0x4   :  { %590 = vsyncadd [#allocation2], 4294967280 }
   0x5   :  { %18 = sfence }
   0x6   :  { %19 = vsyncpa [#allocation5], 0 }
   0x7   :  { %20 = vsyncpa [#allocation8], 0  ;;  %s39_s27 = sshll.u32 %s673_s2, 4  ;;  %s40_s27 = int_to_ptr.hbm [resolvable:$true] %s39_s27 }
   0x8   :  { %21 = vsyncpa [#allocation6], 0  ;;  %s598_s28 = smov [#allocation7]   ;;  %s26_s0 = sshll.u32 %s672_s1, 4  ;;  %s27_s0 = int_to_ptr.hbm [resolvable:$true] %s26_s0 }
   0x9   :  { %s41_s29 = sshll.u32 %s598_s28, 4  ;;  %s599_s8 = smov 64   ;;  %s42_s29 = int_to_ptr.vmem [resolvable:$true] %s41_s29 }
   0xa   :  { %s600_s9 = smov 4   ;;  %s601_s10 = smov [#allocation4]  }
   0xb   :  { %47 = dma.hbm_to_vmem [thread:$0]  %s40_s27, 1024, %s42_s29, [#allocation8], %s599_s8, %s599_s8, %s600_s9  }
   0xc   :  { %s28_s11 = sshll.u32 %s601_s10, 4  ;;  %s602_s12 = smov 128   ;;  %s29_s11 = int_to_ptr.vmem [resolvable:$true] %s28_s11 }
   0xd   :  { %s603_s13 = smov 8   ;;  %s54_s15 = sshll.u32 %s675_s4, 4  ;;  %s55_s15 = int_to_ptr.hbm [resolvable:$true] %s54_s15 }
   0xe   :  { %34 = dma.hbm_to_vmem [thread:$0]  %s27_s0, 896, %s29_s11, [#allocation5], %s602_s12, %s602_s12, %s603_s13  }
   0xf   :  { %s604_s16 = smov [#allocation9]  }
  0x10   :  { %s56_s17 = sshll.u32 %s604_s16, 4  ;;  %s57_s17 = int_to_ptr.vmem [resolvable:$true] %s56_s17 }
  0x11   :  { %62 = dma.hbm_to_vmem [thread:$0]  %s55_s15, 1024, %s57_s17, [#allocation8], %s599_s8, %s599_s8, %s600_s9  }
  0x12   :  { %591 = dma.done.wait [#allocation5], 896  }
  0x13   :  { %592 = vsyncadd [#allocation5], 4294966400 }
  0x14   :  { %593 = dma.done.wait [#allocation8], 2048  }
  0x15   :  { %594 = vsyncadd [#allocation8], 4294965248  ;;  %s79_s1 = sld [smem:[#allocation3]]  ;;  %vm97_vm0 = vcmask 1041408   ;;  %vm95_vm1 = vcmask 1040384   ;;  %v117_v2 = vld [vmem:[#allocation4 + $0x28] sm:$0xff]  ;;  %v77_v4 = vlaneseq }
  0x16   :  { %s369_s18 = sld [smem:[#allocation3 + $0x1]]  ;;  %v118_v1 = vld [vmem:[#allocation4 + $0x30] sm:$0x3]  ;;  %vm99_vm2 = vcmask 1042432   ;;  %vm101_vm3 = vcmask 1043456   ;;  %v116_v7 = vld [vmem:[#allocation4 + $0x20] sm:$0xff] }
  0x17   :  { %s370_s19 = sld [smem:[#allocation3 + $0x2]]  ;;  %377 = vmatpush.msk.msra.mxu0 %vm97_vm0, %v118_v1  ;;  %v452_v8 = vld [vmem:[#allocation7 + $0x38] sm:$0xff]  ;;  %vm103_vm4 = vcmask 1044480   ;;  %v115_v13 = vld [vmem:[#allocation4 + $0x18] sm:$0xff]  ;;  %vm105_vm5 = vcmask 1045504   ;;  %v451_v14 = vld [vmem:[#allocation7 + $0x30] sm:$0xff] }
  0x18   :  { %s371_s20 = sld [smem:[#allocation3 + $0x3]]  ;;  %215 = vmatpush.bf16.msra.mxu1 %v452_v8  ;;  %v78_v16 = vand.u32 127, %v77_v4  ;;  %vm107_vm6 = vcmask 1046528   ;;  %v114_v18 = vld [vmem:[#allocation4 + $0x10] sm:$0xff]  ;;  %v113_v23 = vld [vmem:[#allocation4 + $0x8] sm:$0xff]  ;;  %v450_v25 = vld [vmem:[#allocation7 + $0x28] sm:$0xff] }
  0x19   :  { %s372_s21 = sld [smem:[#allocation3 + $0x4]]  ;;  %136 = vmatpush.msra.mxu0 %v117_v2  ;;  %v112_v26 = vld [vmem:[#allocation4] sm:$0xff]  ;;  %v605_v27 = vmov 0.0   ;;  %vm119_vm8 = vcmask 408576   ;;  %v449_v29 = vld [vmem:[#allocation7 + $0x20] sm:$0xff]  ;;  %v448_v30 = vld [vmem:[#allocation7 + $0x18] sm:$0xff] }
  0x1a   :  { %s654_s22 = sld [smem:[#allocation3 + $0x5]]  ;;  %v447_v31 = vld [vmem:[#allocation7 + $0x10] sm:$0xff]  ;;  %v446_v32 = vld [vmem:[#allocation7 + $0x8] sm:$0xff]  ;;  %v445_v33 = vld [vmem:[#allocation7] sm:$0xff]  ;;  %s358_s30 = sshll.u32 %s677_s6, 4  ;;  %s359_s30 = int_to_ptr.hbm [resolvable:$true] %s358_s30 }
  0x1b   :  { %v80_v0 = vstv %s79_s1  ;;  %s656_s4 = sld [smem:[#allocation3 + $0x6]]  ;;  %137 = vmatpush.msra.mxu0 %v116_v7  ;;  %v460_v36 = vld [vmem:[#allocation9 + $0x38] sm:$0xff]  ;;  %v459_v37 = vld [vmem:[#allocation9 + $0x30] sm:$0xff]  ;;  %v458_v38 = vld [vmem:[#allocation9 + $0x28] sm:$0xff] }
  0x1c   :  { %v82_v3 = vstv %s369_s18  ;;  %s375_s23 = sld [smem:[#allocation3 + $0x7]]  ;;  %216 = vmatpush.bf16.msra.mxu1 %v451_v14  ;;  %317 = vmatpush.bf16.msra.mxu2 %v460_v36  ;;  %v457_v39 = vld [vmem:[#allocation9 + $0x20] sm:$0xff]  ;;  %v456_v40 = vld [vmem:[#allocation9 + $0x18] sm:$0xff]  ;;  %v455_v41 = vld [vmem:[#allocation9 + $0x10] sm:$0xff] }
  0x1d   :  { %v84_v5 = vstv %s370_s19  ;;  %v96_v6 = vsel %vm95_vm1, %v80_v0, %v82_v3  ;;  %138 = vmatpush.msra.mxu0 %v115_v13  ;;  %v454_v42 = vld [vmem:[#allocation9 + $0x8] sm:$0xff]  ;;  %v453_v43 = vld [vmem:[#allocation9] sm:$0xff] }
  0x1e   :  { %v86_v9 = vstv %s371_s20  ;;  %v98_v10 = vsel %vm97_vm0, %v96_v6, %v84_v5  ;;  %v471_v44 = vld [vmem:[%s674_s3] ss:$0 sm:$0xff] }
  0x1f   :  { %v88_v11 = vstv %s372_s21  ;;  %v100_v12 = vsel %vm99_vm2, %v98_v10, %v86_v9  ;;  %139 = vmatpush.msra.mxu0 %v114_v18  ;;  %v472_v63 = vld [vmem:[%s676_s5] ss:$0 sm:$0xff]  ;;  %s606_s5 = smov [#allocation10]  }
  0x20   :  { %v102_v15 = vsel %vm101_vm3, %v100_v12, %v88_v11  ;;  %v90_v17 = vstv %s654_s22  ;;  %217 = vmatpush.bf16.msra.mxu1 %v450_v25  ;;  %318 = vmatpush.bf16.msra.mxu2 %v459_v37  ;;  %s356_s27 = sshll.u32 %s606_s5, 4  ;;  %s357_s27 = int_to_ptr.vmem [resolvable:$true] %s356_s27 }
  0x21   :  { %v92_v19 = vstv %s656_s4  ;;  %v104_v20 = vsel %vm103_vm4, %v102_v15, %v90_v17  ;;  %140 = vmatpush.msra.mxu0 %v113_v23 }
  0x22   :  { %v94_v21 = vstv %s375_s23  ;;  %v106_v22 = vsel %vm105_vm5, %v104_v20, %v92_v19 }
  0x23   :  { %v108_v24 = vsel %vm107_vm6, %v106_v22, %v94_v21  ;;  %141 = vmatpush.msra.mxu0 %v112_v26 }
  0x24   :  { %vm109_vm7 = vcmp.eq.s32.totalorder %v78_v16, %v108_v24  ;;  %218 = vmatpush.bf16.msra.mxu1 %v449_v29  ;;  %319 = vmatpush.bf16.msra.mxu2 %v458_v38 }
  0x25   :  { %v376_v28 = vsel %vm109_vm7, 1.0, %v605_v27 }
  0x26   :  { %378 = vmatmul.msk.f32.vlgmr.msra.gmra.mxu0 %vm119_vm8, %v376_v28 }
  0x28   :  { %219 = vmatpush.bf16.msra.mxu1 %v448_v30  ;;  %320 = vmatpush.bf16.msra.mxu2 %v457_v39 }
  0x2c   :  { %220 = vmatpush.bf16.msra.mxu1 %v447_v31  ;;  %321 = vmatpush.bf16.msra.mxu2 %v456_v40 }
  0x30   :  { %221 = vmatpush.bf16.msra.mxu1 %v446_v32  ;;  %322 = vmatpush.bf16.msra.mxu2 %v455_v41 }
  0x34   :  { %222 = vmatpush.bf16.msra.mxu1 %v445_v33  ;;  %323 = vmatpush.bf16.msra.mxu2 %v454_v42 }
  0x38   :  { %324 = vmatpush.bf16.msra.mxu2 %v453_v43 }
  0xa3   :  { %v143_v34 = vpop.f32.mrf.mxu0 }
  0xa4   :  { %v146_v35 = vpack.c.bf16 %v143_v34, %v143_v34 }
  0xa6   :  { %223 = vmatmul.bf16.vlgmr.msra.gmra.mxu1 %v146_v35 }
 0x123   :  { %v224_v45 = vpop.f32.mrf.mxu1 }
 0x124   :  { %v225_v46 = vadd.f32 %v471_v44, %v224_v45 }
 0x126   :  { %v411_v47 = vmul.f32 -1.442695, %v225_v46 }
 0x128   :  { %473 = vpow2.f32 %v411_v47 }
 0x12b   :  { %v226_v48 = vpop.f32.mrf.mxu1 }
 0x12e   :  { %v474_v49 = vpop.eup %473 }
 0x12f   :  { %v231_v50 = vadd.f32 1.0, %v474_v49 }
 0x131   :  { %475 = vrcp.f32 %v231_v50  ;;  %v243_v54 = vand.u32 2147483648, %v231_v50  ;;  %v241_v56 = vand.u32 2147483647, %v231_v50  ;;  %vm237_vm10 = vweird.f32 %v231_v50 }
 0x133   :  { %v244_v58 = vor.u32 1.1754944e-38, %v243_v54  ;;  %vm242_vm12 = vcmp.eq.f32.partialorder %v241_v56, 8.507059e+37 }
 0x137   :  { %v476_v51 = vpop.eup %475 }
 0x138   :  { %v233_v52 = vmul.f32 %v476_v51, %v231_v50  ;;  %vm238_vm9 = vweird.f32 %v476_v51 }
 0x139   :  { %vm239_vm11 = vmor %vm237_vm10, %vm238_vm9 }
 0x13a   :  { %v234_v53 = vsub.f32 1.0, %v233_v52 }
 0x13c   :  { %v235_v55 = vmul.f32 %v476_v51, %v234_v53 }
 0x13e   :  { %v236_v57 = vadd.f32 %v476_v51, %v235_v55 }
 0x140   :  { %v240_v59 = vsel %vm239_vm11, %v476_v51, %v236_v57 }
 0x141   :  { %v245_v60 = vsel %vm242_vm12, %v244_v58, %v240_v59 }
 0x142   :  { %v247_v61 = vmul.f32 %v245_v60, %v225_v46 }
 0x144   :  { %v248_v62 = vpack.c.bf16 %v247_v61, %v247_v61 }
 0x146   :  { %325 = vmatmul.bf16.vlgmr.msra.gmra.mxu2 %v248_v62 }
 0x1c9   :  { %v326_v0 = vpop.f32.mrf.mxu2 }
 0x1ca   :  { %v327_v1 = vadd.f32 %v472_v63, %v326_v0 }
 0x1cc   :  { %v444_v2 = vmul.f32 -1.442695, %v327_v1 }
 0x1ce   :  { %477 = vpow2.f32 %v444_v2 }
 0x1d1   :  { %v328_v3 = vpop.f32.mrf.mxu2 }
 0x1d4   :  { %v478_v4 = vpop.eup %477 }
 0x1d5   :  { %v333_v5 = vadd.f32 1.0, %v478_v4 }
 0x1d7   :  { %479 = vrcp.f32 %v333_v5  ;;  %v345_v9 = vand.u32 2147483648, %v333_v5  ;;  %v343_v11 = vand.u32 2147483647, %v333_v5  ;;  %vm339_vm14 = vweird.f32 %v333_v5 }
 0x1d9   :  { %v346_v13 = vor.u32 1.1754944e-38, %v345_v9  ;;  %vm344_vm0 = vcmp.eq.f32.partialorder %v343_v11, 8.507059e+37 }
 0x1dd   :  { %v480_v6 = vpop.eup %479 }
 0x1de   :  { %v335_v7 = vmul.f32 %v480_v6, %v333_v5  ;;  %vm340_vm13 = vweird.f32 %v480_v6 }
 0x1df   :  { %vm341_vm15 = vmor %vm339_vm14, %vm340_vm13 }
 0x1e0   :  { %v336_v8 = vsub.f32 1.0, %v335_v7 }
 0x1e2   :  { %v337_v10 = vmul.f32 %v480_v6, %v336_v8 }
 0x1e4   :  { %v338_v12 = vadd.f32 %v480_v6, %v337_v10 }
 0x1e6   :  { %v342_v14 = vsel %vm341_vm15, %v480_v6, %v338_v12 }
 0x1e7   :  { %v347_v15 = vsel %vm344_vm0, %v346_v13, %v342_v14 }
 0x1e8   :  { %v349_v16 = vmul.f32 %v347_v15, %v327_v1 }
 0x1ea   :  { %350 = vst [vmem:[#allocation10] sm:$0xff] %v349_v16 }
 0x1eb   :  { %361 = dma.vmem_to_hbm [thread:$0]  %s357_s27, 128, %s359_s30, [#allocation6]  }
 0x1ec   :  { %595 = dma.done.wait [#allocation6], 128  }
 0x1ed   :  { %596 = vsyncadd [#allocation6], 4294967168 }
 0x1ee   :  { %366 = vsyncpa [#allocation5], 1 }
 0x1ef   :  { %367 = vsyncpa [#allocation8], 1 }
 0x1f0   :  { %368 = vsyncpa [#allocation6], 1 }

</bundles_post_ra>
